<compile_context>
chip_gen: v7x
topology: tpu7x:2x2x1
jax: 0.10.0
libtpu: 0.0.40
codegen_flags: <defaults>
</compile_context>

<pallas_src>
import functools
import math

import jax
import jax.numpy as jnp
from jax.experimental import pallas as pl
from jax.experimental.pallas import tpu as pltpu


def _round_up(x, m):
    return ((x + m - 1) // m) * m


# ----------------------------- Pallas kernel --------------------------------

def _gap_kernel(x_ref, o_ref, acc_ref, *, inv_count, s_total, mask_tail):
    """Row-sum reduction over S with a lane-wide f32 accumulator."""
    sj = pl.program_id(1)
    bm, bs = x_ref.shape
    n_chunks = bs // 128

    @pl.when(sj == 0)
    def _init():
        acc_ref[...] = jnp.zeros_like(acc_ref)

    if mask_tail:
        lane = jax.lax.broadcasted_iota(jnp.int32, (1, 128), 1)
        base = sj * bs

    def load_chunk(c):
        chunk = x_ref[:, c * 128:(c + 1) * 128].astype(jnp.float32)
        if mask_tail:
            # zero lanes past the true row length (exact: we divide by true S)
            chunk = jnp.where(lane < s_total - (base + c * 128), chunk, 0.0)
        return chunk

    # Steady state = elementwise VPU adds only; the cross-lane reduce is
    # deferred to the finalize branch.
    if bm <= 128 and n_chunks > 1:
        # small row tile: keep the running partial in vregs
        partial = jnp.zeros((bm, 128), jnp.float32)
        for c in range(n_chunks):
            partial = partial + load_chunk(c)
        acc_ref[...] += partial
    else:
        # large row tile (small S): stream chunks straight into the VMEM acc
        for c in range(n_chunks):
            acc_ref[...] += load_chunk(c)

    @pl.when(sj == pl.num_programs(1) - 1)
    def _finalize():
        row_sum = jnp.sum(acc_ref[...], axis=1, keepdims=True)   # single XLU reduce
        o_ref[...] = (row_sum * inv_count).astype(o_ref.dtype)


# ------------------------------ tile selection --------------------------------

def _pick_tiles(m, s, itemsize):
    sub = {4: 8, 2: 16, 1: 32}.get(itemsize, 8)       # dtype-aware sublane multiple
    s128 = _round_up(s, 128)
    budget = 8 << 20                                   # bytes per pipelined input block
    max_lanes = 256 * 128                              # caps the unrolled chunk loop

    def bs_for(rows):
        b = (budget // (rows * itemsize)) // 128 * 128
        return max(128, min(b, s128, max_lanes))

    bm = min(_round_up(m, sub), 128)
    bs = bs_for(bm)
    if bs >= s128:
        # whole reduction fits in one block: spend the leftover budget on rows
        bs = s128
        grow = (budget // (bs * itemsize)) // sub * sub
        bm = min(_round_up(m, sub), max(bm, grow, sub), 2048)
    # v7x has two TensorCores: keep the "parallel" row axis >= 2 tiles if possible
    if m > sub and pl.cdiv(m, bm) < 2:
        bm = _round_up(pl.cdiv(m, 2), sub)
        if bs < s128:
            bs = bs_for(bm)
    # single row tile -> use the exact row count (full-dim block, no junk rows)
    if bm >= m:
        bm = m
    return bm, bs


# --------------------------------- wrapper ------------------------------------

def global_avg_pool3d(x):
    """Mean over the last three (spatial) dims, reshaped to (batch, -1)."""
    lead = x.shape[:-3]
    s = math.prod(x.shape[-3:])
    m = math.prod(lead) if lead else 1

    x2 = x.reshape(m, s)                               # free contiguous view
    itemsize = jnp.dtype(x.dtype).itemsize
    bm, bs = _pick_tiles(m, s, itemsize)
    grid = (pl.cdiv(m, bm), pl.cdiv(s, bs))
    mask_tail = (s % bs) != 0

    block_bytes = bm * bs * itemsize
    acc_bytes = bm * 128 * 4
    out_bytes = bm * 128 * itemsize                    # lane-padded
    vmem_limit = min(max(2 * block_bytes + acc_bytes + 2 * out_bytes + (4 << 20),
                         32 << 20), 48 << 20)          # fits v7x's 64 MiB VMEM

    out = pl.pallas_call(
        functools.partial(_gap_kernel,
                          inv_count=1.0 / float(s),
                          s_total=s,
                          mask_tail=mask_tail),
        out_shape=jax.ShapeDtypeStruct((m, 1), x.dtype),
        grid_spec=pltpu.PrefetchScalarGridSpec(
            num_scalar_prefetch=0,
            grid=grid,
            in_specs=[pl.BlockSpec((bm, bs), lambda i, j: (i, j))],
            out_specs=pl.BlockSpec((bm, 1), lambda i, j: (i, 0)),
            scratch_shapes=[pltpu.VMEM((bm, 128), jnp.float32)],
        ),
        compiler_params=pltpu.CompilerParams(
            dimension_semantics=("parallel", "arbitrary"),
            vmem_limit_bytes=int(vmem_limit),
        ),
        cost_estimate=pl.CostEstimate(
            flops=m * s,
            transcendentals=0,
            bytes_accessed=m * s * itemsize + m * itemsize,
        ),
    )(x2)

    return out.reshape(x.shape[0], -1)


# ----------------------------------- main --------------------------------------

if __name__ == "__main__":
    key = jax.random.PRNGKey(0)
    configs = [
        ((2, 4, 16, 16, 16), jnp.float32),   # lane-aligned S
        ((2, 3, 5, 7, 9), jnp.float32),      # ragged S (masked tail), odd row count
        ((2, 16, 8, 8, 8), jnp.bfloat16),    # packed dtype (16-row sublane tiles)
    ]
    for shape, dt in configs:
        key, sk = jax.random.split(key)
        x = jax.random.normal(sk, shape, jnp.float32).astype(dt)
        out = jax.block_until_ready(jax.jit(global_avg_pool3d)(x))
        assert out.shape == (shape[0], shape[1])
        ref = jnp.mean(x.astype(jnp.float32).reshape(shape[0], shape[1], -1),
                       axis=-1).astype(dt)
        tol = 1e-5 if dt == jnp.float32 else 1e-2
        assert jnp.allclose(out.astype(jnp.float32), ref.astype(jnp.float32),
                            atol=tol, rtol=tol), f"mismatch for {shape} {dt}"
    print("KERNEL_OK")
</pallas_src>

<mosaic_0001>
module attributes {stable_mosaic.version = 11 : i64} {
  func.func @_gap_kernel(%arg0: i32, %arg1: i32, %arg2: memref<8x4096xf32, #tpu.memory_space<vmem>>, %arg3: memref<8x1xf32, #tpu.memory_space<vmem>>, %arg4: memref<8x128xf32, #tpu.memory_space<vmem>>) attributes {dimension_semantics = [#tpu.dimension_semantics<parallel>, #tpu.dimension_semantics<arbitrary>], iteration_bounds = array<i64: 1, 1>, scalar_prefetch = 0 : i64, scratch_operands = 1 : i64, tpu.core_type = #tpu.core_type<tc>, window_params = [{transform_indices = @transform_0, window_bounds = array<i64: 8, 4096>}, {transform_indices = @transform_1, window_bounds = array<i64: 8, 1>}]} {
    %c0_i32 = arith.constant 0 : i32
    %0 = arith.cmpi eq, %arg1, %c0_i32 : i32
    %1 = arith.extui %0 : i1 to i32
    %c0_i32_0 = arith.constant 0 : i32
    %2 = arith.cmpi ne, %1, %c0_i32_0 : i32
    scf.if %2 {
      %cst_39 = arith.constant 0.000000e+00 : f32
      %74 = vector.broadcast %cst_39 : f32 to vector<8x128xf32>
      %c0_40 = arith.constant 0 : index
      %c0_41 = arith.constant 0 : index
      %75 = vector.load %arg4[%c0_40, %c0_41] : memref<8x128xf32, #tpu.memory_space<vmem>>, vector<8x128xf32>
      tpu.vector_store %arg4[%c0_40, %c0_41], %74 {strides = array<i32>} : memref<8x128xf32, #tpu.memory_space<vmem>>, vector<8x128xf32>,
    } else {
    }
    %cst = arith.constant 0.000000e+00 : f32
    %3 = vector.broadcast %cst : f32 to vector<8x128xf32>
    %c0 = arith.constant 0 : index
    %c0_1 = arith.constant 0 : index
    %4 = vector.load %arg2[%c0, %c0_1] : memref<8x4096xf32, #tpu.memory_space<vmem>>, vector<8x128xf32>
    %5 = arith.addf %3, %4 : vector<8x128xf32>
    %c0_2 = arith.constant 0 : index
    %c128 = arith.constant 128 : index
    %6 = vector.load %arg2[%c0_2, %c128] : memref<8x4096xf32, #tpu.memory_space<vmem>>, vector<8x128xf32>
    %7 = arith.addf %5, %6 : vector<8x128xf32>
    %c0_3 = arith.constant 0 : index
    %c256 = arith.constant 256 : index
    %8 = vector.load %arg2[%c0_3, %c256] : memref<8x4096xf32, #tpu.memory_space<vmem>>, vector<8x128xf32>
    %9 = arith.addf %7, %8 : vector<8x128xf32>
    %c0_4 = arith.constant 0 : index
    %c384 = arith.constant 384 : index
    %10 = vector.load %arg2[%c0_4, %c384] : memref<8x4096xf32, #tpu.memory_space<vmem>>, vector<8x128xf32>
    %11 = arith.addf %9, %10 : vector<8x128xf32>
    %c0_5 = arith.constant 0 : index
    %c512 = arith.constant 512 : index
    %12 = vector.load %arg2[%c0_5, %c512] : memref<8x4096xf32, #tpu.memory_space<vmem>>, vector<8x128xf32>
    %13 = arith.addf %11, %12 : vector<8x128xf32>
    %c0_6 = arith.constant 0 : index
    %c640 = arith.constant 640 : index
    %14 = vector.load %arg2[%c0_6, %c640] : memref<8x4096xf32, #tpu.memory_space<vmem>>, vector<8x128xf32>
    %15 = arith.addf %13, %14 : vector<8x128xf32>
    %c0_7 = arith.constant 0 : index
    %c768 = arith.constant 768 : index
    %16 = vector.load %arg2[%c0_7, %c768] : memref<8x4096xf32, #tpu.memory_space<vmem>>, vector<8x128xf32>
    %17 = arith.addf %15, %16 : vector<8x128xf32>
    %c0_8 = arith.constant 0 : index
    %c896 = arith.constant 896 : index
    %18 = vector.load %arg2[%c0_8, %c896] : memref<8x4096xf32, #tpu.memory_space<vmem>>, vector<8x128xf32>
    %19 = arith.addf %17, %18 : vector<8x128xf32>
    %c0_9 = arith.constant 0 : index
    %c1024 = arith.constant 1024 : index
    %20 = vector.load %arg2[%c0_9, %c1024] : memref<8x4096xf32, #tpu.memory_space<vmem>>, vector<8x128xf32>
    %21 = arith.addf %19, %20 : vector<8x128xf32>
    %c0_10 = arith.constant 0 : index
    %c1152 = arith.constant 1152 : index
    %22 = vector.load %arg2[%c0_10, %c1152] : memref<8x4096xf32, #tpu.memory_space<vmem>>, vector<8x128xf32>
    %23 = arith.addf %21, %22 : vector<8x128xf32>
    %c0_11 = arith.constant 0 : index
    %c1280 = arith.constant 1280 : index
    %24 = vector.load %arg2[%c0_11, %c1280] : memref<8x4096xf32, #tpu.memory_space<vmem>>, vector<8x128xf32>
    %25 = arith.addf %23, %24 : vector<8x128xf32>
    %c0_12 = arith.constant 0 : index
    %c1408 = arith.constant 1408 : index
    %26 = vector.load %arg2[%c0_12, %c1408] : memref<8x4096xf32, #tpu.memory_space<vmem>>, vector<8x128xf32>
    %27 = arith.addf %25, %26 : vector<8x128xf32>
    %c0_13 = arith.constant 0 : index
    %c1536 = arith.constant 1536 : index
    %28 = vector.load %arg2[%c0_13, %c1536] : memref<8x4096xf32, #tpu.memory_space<vmem>>, vector<8x128xf32>
    %29 = arith.addf %27, %28 : vector<8x128xf32>
    %c0_14 = arith.constant 0 : index
    %c1664 = arith.constant 1664 : index
    %30 = vector.load %arg2[%c0_14, %c1664] : memref<8x4096xf32, #tpu.memory_space<vmem>>, vector<8x128xf32>
    %31 = arith.addf %29, %30 : vector<8x128xf32>
    %c0_15 = arith.constant 0 : index
    %c1792 = arith.constant 1792 : index
    %32 = vector.load %arg2[%c0_15, %c1792] : memref<8x4096xf32, #tpu.memory_space<vmem>>, vector<8x128xf32>
    %33 = arith.addf %31, %32 : vector<8x128xf32>
    %c0_16 = arith.constant 0 : index
    %c1920 = arith.constant 1920 : index
    %34 = vector.load %arg2[%c0_16, %c1920] : memref<8x4096xf32, #tpu.memory_space<vmem>>, vector<8x128xf32>
    %35 = arith.addf %33, %34 : vector<8x128xf32>
    %c0_17 = arith.constant 0 : index
    %c2048 = arith.constant 2048 : index
    %36 = vector.load %arg2[%c0_17, %c2048] : memref<8x4096xf32, #tpu.memory_space<vmem>>, vector<8x128xf32>
    %37 = arith.addf %35, %36 : vector<8x128xf32>
    %c0_18 = arith.constant 0 : index
    %c2176 = arith.constant 2176 : index
    %38 = vector.load %arg2[%c0_18, %c2176] : memref<8x4096xf32, #tpu.memory_space<vmem>>, vector<8x128xf32>
    %39 = arith.addf %37, %38 : vector<8x128xf32>
    %c0_19 = arith.constant 0 : index
    %c2304 = arith.constant 2304 : index
    %40 = vector.load %arg2[%c0_19, %c2304] : memref<8x4096xf32, #tpu.memory_space<vmem>>, vector<8x128xf32>
    %41 = arith.addf %39, %40 : vector<8x128xf32>
    %c0_20 = arith.constant 0 : index
    %c2432 = arith.constant 2432 : index
    %42 = vector.load %arg2[%c0_20, %c2432] : memref<8x4096xf32, #tpu.memory_space<vmem>>, vector<8x128xf32>
    %43 = arith.addf %41, %42 : vector<8x128xf32>
    %c0_21 = arith.constant 0 : index
    %c2560 = arith.constant 2560 : index
    %44 = vector.load %arg2[%c0_21, %c2560] : memref<8x4096xf32, #tpu.memory_space<vmem>>, vector<8x128xf32>
    %45 = arith.addf %43, %44 : vector<8x128xf32>
    %c0_22 = arith.constant 0 : index
    %c2688 = arith.constant 2688 : index
    %46 = vector.load %arg2[%c0_22, %c2688] : memref<8x4096xf32, #tpu.memory_space<vmem>>, vector<8x128xf32>
    %47 = arith.addf %45, %46 : vector<8x128xf32>
    %c0_23 = arith.constant 0 : index
    %c2816 = arith.constant 2816 : index
    %48 = vector.load %arg2[%c0_23, %c2816] : memref<8x4096xf32, #tpu.memory_space<vmem>>, vector<8x128xf32>
    %49 = arith.addf %47, %48 : vector<8x128xf32>
    %c0_24 = arith.constant 0 : index
    %c2944 = arith.constant 2944 : index
    %50 = vector.load %arg2[%c0_24, %c2944] : memref<8x4096xf32, #tpu.memory_space<vmem>>, vector<8x128xf32>
    %51 = arith.addf %49, %50 : vector<8x128xf32>
    %c0_25 = arith.constant 0 : index
    %c3072 = arith.constant 3072 : index
    %52 = vector.load %arg2[%c0_25, %c3072] : memref<8x4096xf32, #tpu.memory_space<vmem>>, vector<8x128xf32>
    %53 = arith.addf %51, %52 : vector<8x128xf32>
    %c0_26 = arith.constant 0 : index
    %c3200 = arith.constant 3200 : index
    %54 = vector.load %arg2[%c0_26, %c3200] : memref<8x4096xf32, #tpu.memory_space<vmem>>, vector<8x128xf32>
    %55 = arith.addf %53, %54 : vector<8x128xf32>
    %c0_27 = arith.constant 0 : index
    %c3328 = arith.constant 3328 : index
    %56 = vector.load %arg2[%c0_27, %c3328] : memref<8x4096xf32, #tpu.memory_space<vmem>>, vector<8x128xf32>
    %57 = arith.addf %55, %56 : vector<8x128xf32>
    %c0_28 = arith.constant 0 : index
    %c3456 = arith.constant 3456 : index
    %58 = vector.load %arg2[%c0_28, %c3456] : memref<8x4096xf32, #tpu.memory_space<vmem>>, vector<8x128xf32>
    %59 = arith.addf %57, %58 : vector<8x128xf32>
    %c0_29 = arith.constant 0 : index
    %c3584 = arith.constant 3584 : index
    %60 = vector.load %arg2[%c0_29, %c3584] : memref<8x4096xf32, #tpu.memory_space<vmem>>, vector<8x128xf32>
    %61 = arith.addf %59, %60 : vector<8x128xf32>
    %c0_30 = arith.constant 0 : index
    %c3712 = arith.constant 3712 : index
    %62 = vector.load %arg2[%c0_30, %c3712] : memref<8x4096xf32, #tpu.memory_space<vmem>>, vector<8x128xf32>
    %63 = arith.addf %61, %62 : vector<8x128xf32>
    %c0_31 = arith.constant 0 : index
    %c3840 = arith.constant 3840 : index
    %64 = vector.load %arg2[%c0_31, %c3840] : memref<8x4096xf32, #tpu.memory_space<vmem>>, vector<8x128xf32>
    %65 = arith.addf %63, %64 : vector<8x128xf32>
    %c0_32 = arith.constant 0 : index
    %c3968 = arith.constant 3968 : index
    %66 = vector.load %arg2[%c0_32, %c3968] : memref<8x4096xf32, #tpu.memory_space<vmem>>, vector<8x128xf32>
    %67 = arith.addf %65, %66 : vector<8x128xf32>
    %c0_33 = arith.constant 0 : index
    %c0_34 = arith.constant 0 : index
    %68 = vector.load %arg4[%c0_33, %c0_34] : memref<8x128xf32, #tpu.memory_space<vmem>>, vector<8x128xf32>
    %69 = arith.addf %68, %67 : vector<8x128xf32>
    %c0_35 = arith.constant 0 : index
    %c0_36 = arith.constant 0 : index
    %70 = vector.load %arg4[%c0_35, %c0_36] : memref<8x128xf32, #tpu.memory_space<vmem>>, vector<8x128xf32>
    tpu.vector_store %arg4[%c0_35, %c0_36], %69 {strides = array<i32>} : memref<8x128xf32, #tpu.memory_space<vmem>>, vector<8x128xf32>,
    %c0_i32_37 = arith.constant 0 : i32
    %71 = arith.cmpi eq, %arg1, %c0_i32_37 : i32
    %72 = arith.extui %71 : i1 to i32
    %c0_i32_38 = arith.constant 0 : i32
    %73 = arith.cmpi ne, %72, %c0_i32_38 : i32
    scf.if %73 {
      %c0_39 = arith.constant 0 : index
      %c0_40 = arith.constant 0 : index
      %74 = vector.load %arg4[%c0_39, %c0_40] : memref<8x128xf32, #tpu.memory_space<vmem>>, vector<8x128xf32>
      %cst_41 = arith.constant dense<0.000000e+00> : vector<8xf32>
      %75 = vector.multi_reduction <add>, %74, %cst_41 [1] : vector<8x128xf32> to vector<8xf32>
      %76 = vector.shape_cast %75 : vector<8xf32> to vector<8x1xf32>
      %cst_42 = arith.constant 2.44140625E-4 : f32
      %77 = vector.broadcast %cst_42 : f32 to vector<8x1xf32>
      %78 = arith.mulf %76, %77 : vector<8x1xf32>
      %c0_43 = arith.constant 0 : index
      %c0_44 = arith.constant 0 : index
      %79 = vector.load %arg3[%c0_43, %c0_44] : memref<8x1xf32, #tpu.memory_space<vmem>>, vector<8x1xf32>
      tpu.vector_store %arg3[%c0_43, %c0_44], %78 {strides = array<i32>} : memref<8x1xf32, #tpu.memory_space<vmem>>, vector<8x1xf32>,
    } else {
    }
    return
  }
  func.func @transform_0(%arg0: i32, %arg1: i32) -> (i32, i32) {
    %c0_i32 = arith.constant 0 : i32
    return %arg0, %arg1 : i32, i32
  }
  func.func @transform_1(%arg0: i32, %arg1: i32) -> (i32, i32) {
    %c0_i32 = arith.constant 0 : i32
    %c0_i32_0 = arith.constant 0 : i32
    return %arg0, %c0_i32 : i32, i32
  }
}

</mosaic_0001>

<bundles_post_ra>
// kernel: global_avg_pool3d.1
= control target key start
LH: loop header
LB: loop body
LE: loop exit
PB: predicated region body
PF: predicated region fallthrough
CT: control target
= control target key end

     0   :  { %vm87_vm0 = vcmask 7168   ;;  %s202_s0 = inlined_call_operand.vmem [shape: f32[8,4096], index: 0, kind: input, shape index: {}]   ;;  %s203_s1 = inlined_call_operand.vmem [shape: f32[8,1], index: 1, kind: output, shape index: {}]  }
   0x1   :  { %v13_v0 = vld [vmem:[%s202_s0] sm:$0xff]  ;;  %v15_v1 = vld [vmem:[%s202_s0 + $0x8] sm:$0xff]  ;;  %v17_v2 = vld [vmem:[%s202_s0 + $0x10] sm:$0xff] }
   0x2   :  { %v16_v3 = vadd.f32 %v15_v1, %v13_v0  ;;  %v19_v4 = vld [vmem:[%s202_s0 + $0x18] sm:$0xff]  ;;  %v21_v6 = vld [vmem:[%s202_s0 + $0x20] sm:$0xff]  ;;  %v23_v8 = vld [vmem:[%s202_s0 + $0x28] sm:$0xff] }
   0x3   :  { %v25_v10 = vld [vmem:[%s202_s0 + $0x30] sm:$0xff]  ;;  %v27_v12 = vld [vmem:[%s202_s0 + $0x38] sm:$0xff]  ;;  %v29_v14 = vld [vmem:[%s202_s0 + $0x40] sm:$0xff] }
   0x4   :  { %v18_v5 = vadd.f32 %v17_v2, %v16_v3  ;;  %v31_v16 = vld [vmem:[%s202_s0 + $0x48] sm:$0xff]  ;;  %v33_v18 = vld [vmem:[%s202_s0 + $0x50] sm:$0xff]  ;;  %v35_v20 = vld [vmem:[%s202_s0 + $0x58] sm:$0xff] }
   0x5   :  { %v37_v22 = vld [vmem:[%s202_s0 + $0x60] sm:$0xff]  ;;  %v39_v24 = vld [vmem:[%s202_s0 + $0x68] sm:$0xff]  ;;  %v41_v26 = vld [vmem:[%s202_s0 + $0x70] sm:$0xff] }
   0x6   :  { %v20_v7 = vadd.f32 %v19_v4, %v18_v5  ;;  %v43_v28 = vld [vmem:[%s202_s0 + $0x78] sm:$0xff]  ;;  %v45_v30 = vld [vmem:[%s202_s0 + $0x80] sm:$0xff]  ;;  %v47_v32 = vld [vmem:[%s202_s0 + $0x88] sm:$0xff] }
   0x7   :  { %v49_v34 = vld [vmem:[%s202_s0 + $0x90] sm:$0xff]  ;;  %v51_v36 = vld [vmem:[%s202_s0 + $0x98] sm:$0xff]  ;;  %v53_v38 = vld [vmem:[%s202_s0 + $0xa0] sm:$0xff] }
   0x8   :  { %v22_v9 = vadd.f32 %v21_v6, %v20_v7  ;;  %v55_v40 = vld [vmem:[%s202_s0 + $0xa8] sm:$0xff]  ;;  %v57_v42 = vld [vmem:[%s202_s0 + $0xb0] sm:$0xff]  ;;  %v59_v44 = vld [vmem:[%s202_s0 + $0xb8] sm:$0xff] }
   0x9   :  { %v61_v46 = vld [vmem:[%s202_s0 + $0xc0] sm:$0xff]  ;;  %v63_v48 = vld [vmem:[%s202_s0 + $0xc8] sm:$0xff]  ;;  %v65_v50 = vld [vmem:[%s202_s0 + $0xd0] sm:$0xff] }
   0xa   :  { %v24_v11 = vadd.f32 %v23_v8, %v22_v9  ;;  %v67_v52 = vld [vmem:[%s202_s0 + $0xd8] sm:$0xff]  ;;  %v69_v54 = vld [vmem:[%s202_s0 + $0xe0] sm:$0xff]  ;;  %v71_v56 = vld [vmem:[%s202_s0 + $0xe8] sm:$0xff] }
   0xb   :  { %v73_v58 = vld [vmem:[%s202_s0 + $0xf0] sm:$0xff]  ;;  %v75_v60 = vld [vmem:[%s202_s0 + $0xf8] sm:$0xff] }
   0xc   :  { %v26_v13 = vadd.f32 %v25_v10, %v24_v11 }
   0xe   :  { %v28_v15 = vadd.f32 %v27_v12, %v26_v13 }
  0x10   :  { %v30_v17 = vadd.f32 %v29_v14, %v28_v15 }
  0x12   :  { %v32_v19 = vadd.f32 %v31_v16, %v30_v17 }
  0x14   :  { %v34_v21 = vadd.f32 %v33_v18, %v32_v19 }
  0x16   :  { %v36_v23 = vadd.f32 %v35_v20, %v34_v21 }
  0x18   :  { %v38_v25 = vadd.f32 %v37_v22, %v36_v23 }
  0x1a   :  { %v40_v27 = vadd.f32 %v39_v24, %v38_v25 }
  0x1c   :  { %v42_v29 = vadd.f32 %v41_v26, %v40_v27 }
  0x1e   :  { %v44_v31 = vadd.f32 %v43_v28, %v42_v29 }
  0x20   :  { %v46_v33 = vadd.f32 %v45_v30, %v44_v31 }
  0x22   :  { %v48_v35 = vadd.f32 %v47_v32, %v46_v33 }
  0x24   :  { %v50_v37 = vadd.f32 %v49_v34, %v48_v35 }
  0x26   :  { %v52_v39 = vadd.f32 %v51_v36, %v50_v37 }
  0x28   :  { %v54_v41 = vadd.f32 %v53_v38, %v52_v39 }
  0x2a   :  { %v56_v43 = vadd.f32 %v55_v40, %v54_v41 }
  0x2c   :  { %v58_v45 = vadd.f32 %v57_v42, %v56_v43 }
  0x2e   :  { %v60_v47 = vadd.f32 %v59_v44, %v58_v45 }
  0x30   :  { %v62_v49 = vadd.f32 %v61_v46, %v60_v47 }
  0x32   :  { %v64_v51 = vadd.f32 %v63_v48, %v62_v49 }
  0x34   :  { %v66_v53 = vadd.f32 %v65_v50, %v64_v51 }
  0x36   :  { %v68_v55 = vadd.f32 %v67_v52, %v66_v53 }
  0x38   :  { %v70_v57 = vadd.f32 %v69_v54, %v68_v55 }
  0x3a   :  { %v72_v59 = vadd.f32 %v71_v56, %v70_v57 }
  0x3c   :  { %v74_v61 = vadd.f32 %v73_v58, %v72_v59 }
  0x3e   :  { %v76_v62 = vadd.f32 %v75_v60, %v74_v61 }
  0x40   :  { %84 = vadd.xlane.f32.xlu0 %v76_v62 }
  0xcd   :  { %v85_v63 = vpop.xlane.xlu0 %84 }
  0xce   :  { %v86_v0 = vmul.f32 0.00024414063, %v85_v63 }
  0xd0   :  { %88 = vst.msk [vmem:[%s203_s1] sm:$0xff] %vm87_vm0, %v86_v0 }

</bundles_post_ra>
